<compile_context>
chip_gen: v7x
topology: tpu7x:2x2x1
jax: 0.10.0
libtpu: 0.0.40
codegen_flags: <defaults>
</compile_context>

<pallas_src>
import math

import jax
import jax.numpy as jnp
from jax.experimental import pallas as pl
from jax.experimental.pallas import tpu as pltpu

_LANE = 128          # lane width (last dim)
_SUBLANE_BF16 = 16   # packed bf16 vreg is (16, 128)


def _round_up(x, m):
    return (x + m - 1) // m * m


def _rnn_cell_kernel(x_ref, h_ref, w_ref, v_ref, b_ref, out_ref, acc_ref):
    """One grid step of h_new = tanh(x @ W + h @ V + b).

    Grid = (hidden_tiles, batch_tiles, k_tiles); K (vocab) is the innermost
    "arbitrary" reduction axis accumulated into an f32 VMEM scratch.
    """
    k = pl.program_id(2)

    @pl.when(k == 0)
    def _():
        # Seed the accumulator with the small recurrent matmul h @ V.
        # Its block indices do not depend on k, so these blocks are revisited
        # (no re-DMA) across the K loop.
        acc_ref[...] = jnp.dot(h_ref[...], v_ref[...],
                               preferred_element_type=jnp.float32)

    acc_ref[...] += jnp.dot(x_ref[...], w_ref[...],
                            preferred_element_type=jnp.float32)

    @pl.when(k == pl.num_programs(2) - 1)
    def _():
        # f32 bias add + tanh epilogue (VPU/EUP ride under the MXU), then cast.
        out_ref[...] = jnp.tanh(acc_ref[...] + b_ref[...]).astype(out_ref.dtype)


def make_basic_rnn_cell(W, V, b, *, tile_b=None, tile_h=None, tile_k=None,
                        out_dtype=None):
    """Prepare the weights ONCE and return a jitted (x, h) -> h_new step fn."""
    vocab, hidden = W.shape
    assert V.shape == (hidden, hidden)
    assert b.shape == (hidden,)

    # ---- tile sizes (sized for v7x's 64 MiB VMEM; fine on v5e / v6e) -------
    if tile_h is None:
        tile_h = min(_round_up(hidden, _LANE), 256)
    tile_h = _round_up(tile_h, _LANE)
    Hp = _round_up(hidden, tile_h)

    if tile_k is None:
        tile_k = min(_round_up(vocab, _LANE), 512)
    tile_k = _round_up(tile_k, _LANE)
    Kp = _round_up(vocab, tile_k)

    # ---- one-time weight materialization (bf16 cast + lane padding) --------
    # Done here, not per call: per-call weight concat/cast/pad was more HBM
    # traffic than the kernel itself reads.
    Wp = jnp.pad(W.astype(jnp.bfloat16), ((0, Kp - vocab), (0, Hp - hidden)))
    Vp = jnp.pad(V.astype(jnp.bfloat16), ((0, 0), (0, Hp - hidden)))
    b2 = jnp.pad(b.astype(jnp.float32).reshape(1, hidden),
                 ((0, 0), (0, Hp - hidden)))

    def cell(x, h):
        B, vx = x.shape
        Bh, hh = h.shape
        assert vx == vocab and hh == hidden and B == Bh
        odt = out_dtype if out_dtype is not None else x.dtype

        tb = tile_b
        if tb is None:
            tb = min(_round_up(B, _SUBLANE_BF16), 256)
        tb = _round_up(tb, _SUBLANE_BF16)
        Bp = _round_up(B, tb)

        # Activations are small: per-call cast/pad is cheap (unlike weights).
        xp = jnp.pad(x.astype(jnp.bfloat16), ((0, Bp - B), (0, Kp - vocab)))
        hp = jnp.pad(h.astype(jnp.bfloat16), ((0, Bp - B), (0, 0)))

        grid = (Hp // tile_h, Bp // tb, Kp // tile_k)

        # Double-buffered input tiles + output tile + f32 accumulator.
        vmem = (2 * (tb * tile_k + tile_k * tile_h
                     + tb * hidden + hidden * tile_h) * 2
                + 2 * tile_h * 4
                + 2 * tb * tile_h * jnp.dtype(odt).itemsize
                + tb * tile_h * 4)
        vmem_limit = int(min(max(vmem * 2, 16 << 20), 60 << 20))

        out = pl.pallas_call(
            _rnn_cell_kernel,
            out_shape=jax.ShapeDtypeStruct((Bp, Hp), odt),
            grid_spec=pltpu.PrefetchScalarGridSpec(
                num_scalar_prefetch=0,
                grid=grid,
                in_specs=[
                    pl.BlockSpec((tb, tile_k), lambda j, i, k: (i, k)),      # x
                    pl.BlockSpec((tb, hidden), lambda j, i, k: (i, 0)),      # h
                    pl.BlockSpec((tile_k, tile_h), lambda j, i, k: (k, j)),  # W
                    pl.BlockSpec((hidden, tile_h), lambda j, i, k: (0, j)),  # V
                    pl.BlockSpec((1, tile_h), lambda j, i, k: (0, j)),       # b
                ],
                out_specs=pl.BlockSpec((tb, tile_h), lambda j, i, k: (i, j)),
                scratch_shapes=[pltpu.VMEM((tb, tile_h), jnp.float32)],
            ),
            compiler_params=pltpu.CompilerParams(
                dimension_semantics=("parallel", "parallel", "arbitrary"),
                vmem_limit_bytes=vmem_limit,
            ),
        )(xp, hp, Wp, Vp, b2)

        # Strip lane/sublane padding.
        return out[:B, :hidden]

    return jax.jit(cell)


def basic_rnn_cell(x, h, W, V, b, **kwargs):
    """Convenience one-shot wrapper (prepares weights on every call).

    For a real RNN, build the cell once with make_basic_rnn_cell(...) and
    reuse it across timesteps so the bf16 weight cast/pad happens once.
    """
    return make_basic_rnn_cell(W, V, b, **kwargs)(x, h)


def init_params(key, vocab_size, hidden_size, dtype=jnp.float32):
    """Matches the PyTorch module init: uniform(-k, k), k = 1/sqrt(hidden)."""
    k = math.sqrt(1.0 / hidden_size)
    kw, kv, kb = jax.random.split(key, 3)
    W = jax.random.uniform(kw, (vocab_size, hidden_size), dtype, minval=-k, maxval=k)
    V = jax.random.uniform(kv, (hidden_size, hidden_size), dtype, minval=-k, maxval=k)
    b = jax.random.uniform(kb, (hidden_size,), dtype, minval=-k, maxval=k)
    return W, V, b


if __name__ == "__main__":
    vocab_size = 64
    hidden_size = 32
    batch = 8

    key = jax.random.PRNGKey(0)
    kx, kh, kp = jax.random.split(key, 3)

    x = jax.random.normal(kx, (batch, vocab_size), jnp.float32)
    h = jax.random.normal(kh, (batch, hidden_size), jnp.float32)
    W, V, b = init_params(kp, vocab_size, hidden_size)

    # Build the cell once (weights cast/padded to bf16 a single time), reuse it.
    cell = make_basic_rnn_cell(W, V, b)

    h1 = jax.block_until_ready(cell(x, h))

    # Reference in plain JAX (f32). Kernel uses bf16 matmul operands with f32
    # accumulation, so allow a correspondingly loose tolerance.
    h1_ref = jnp.tanh(x @ W + h @ V + b)
    assert h1.shape == (batch, hidden_size)
    assert jnp.allclose(h1, h1_ref, atol=2e-2, rtol=2e-2), (
        float(jnp.max(jnp.abs(h1 - h1_ref))))

    # Second step to exercise reuse of the prepared weights (recurrent use).
    h2 = jax.block_until_ready(cell(x, h1))
    h2_ref = jnp.tanh(x @ W + h1_ref @ V + b)
    assert jnp.allclose(h2, h2_ref, atol=3e-2, rtol=3e-2), (
        float(jnp.max(jnp.abs(h2 - h2_ref))))

    print("KERNEL_OK")
</pallas_src>

<mosaic_0001>
module attributes {stable_mosaic.version = 11 : i64} {
  func.func @_rnn_cell_kernel(%arg0: i32, %arg1: i32, %arg2: i32, %arg3: memref<16x128xbf16, #tpu.memory_space<vmem>>, %arg4: memref<16x32xbf16, #tpu.memory_space<vmem>>, %arg5: memref<128x128xbf16, #tpu.memory_space<vmem>>, %arg6: memref<32x128xbf16, #tpu.memory_space<vmem>>, %arg7: memref<1x128xf32, #tpu.memory_space<vmem>>, %arg8: memref<16x128xf32, #tpu.memory_space<vmem>>, %arg9: memref<16x128xf32, #tpu.memory_space<vmem>>) attributes {dimension_semantics = [#tpu.dimension_semantics<parallel>, #tpu.dimension_semantics<parallel>, #tpu.dimension_semantics<arbitrary>], iteration_bounds = array<i64: 1, 1, 1>, scalar_prefetch = 0 : i64, scratch_operands = 1 : i64, tpu.core_type = #tpu.core_type<tc>, window_params = [{transform_indices = @transform_0, window_bounds = array<i64: 16, 128>}, {transform_indices = @transform_1, window_bounds = array<i64: 16, 32>}, {transform_indices = @transform_2, window_bounds = array<i64: 128, 128>}, {transform_indices = @transform_3, window_bounds = array<i64: 32, 128>}, {transform_indices = @transform_4, window_bounds = array<i64: 1, 128>}, {transform_indices = @transform_5, window_bounds = array<i64: 16, 128>}]} {
    %c0_i32 = arith.constant 0 : i32
    %0 = arith.cmpi eq, %arg2, %c0_i32 : i32
    %1 = arith.extui %0 : i1 to i32
    %c0_i32_0 = arith.constant 0 : i32
    %2 = arith.cmpi ne, %1, %c0_i32_0 : i32
    scf.if %2 {
      %c0_10 = arith.constant 0 : index
      %c0_11 = arith.constant 0 : index
      %12 = vector.load %arg4[%c0_10, %c0_11] : memref<16x32xbf16, #tpu.memory_space<vmem>>, vector<16x32xbf16>
      %c0_12 = arith.constant 0 : index
      %c0_13 = arith.constant 0 : index
      %13 = vector.load %arg6[%c0_12, %c0_13] : memref<32x128xbf16, #tpu.memory_space<vmem>>, vector<32x128xbf16>
      %cst_14 = arith.constant dense<0.000000e+00> : vector<16x128xf32>
      %14 = tpu.matmul %12, %13, %cst_14 {dimension_numbers = #tpu.dot_dimension_numbers<[1], [0], [0], [1], [0, 0, 1, 1], [], []>} : vector<16x32xbf16>, vector<32x128xbf16>, vector<16x128xf32> -> vector<16x128xf32>
      %c0_15 = arith.constant 0 : index
      %c0_16 = arith.constant 0 : index
      %15 = vector.load %arg9[%c0_15, %c0_16] : memref<16x128xf32, #tpu.memory_space<vmem>>, vector<16x128xf32>
      tpu.vector_store %arg9[%c0_15, %c0_16], %14 {strides = array<i32>} : memref<16x128xf32, #tpu.memory_space<vmem>>, vector<16x128xf32>,
    } else {
    }
    %c0 = arith.constant 0 : index
    %c0_1 = arith.constant 0 : index
    %3 = vector.load %arg9[%c0, %c0_1] : memref<16x128xf32, #tpu.memory_space<vmem>>, vector<16x128xf32>
    %c0_2 = arith.constant 0 : index
    %c0_3 = arith.constant 0 : index
    %4 = vector.load %arg3[%c0_2, %c0_3] : memref<16x128xbf16, #tpu.memory_space<vmem>>, vector<16x128xbf16>
    %c0_4 = arith.constant 0 : index
    %c0_5 = arith.constant 0 : index
    %5 = vector.load %arg5[%c0_4, %c0_5] : memref<128x128xbf16, #tpu.memory_space<vmem>>, vector<128x128xbf16>
    %cst = arith.constant dense<0.000000e+00> : vector<16x128xf32>
    %6 = tpu.matmul %4, %5, %cst {dimension_numbers = #tpu.dot_dimension_numbers<[1], [0], [0], [1], [0, 0, 1, 1], [], []>} : vector<16x128xbf16>, vector<128x128xbf16>, vector<16x128xf32> -> vector<16x128xf32>
    %7 = arith.addf %3, %6 : vector<16x128xf32>
    %c0_6 = arith.constant 0 : index
    %c0_7 = arith.constant 0 : index
    %8 = vector.load %arg9[%c0_6, %c0_7] : memref<16x128xf32, #tpu.memory_space<vmem>>, vector<16x128xf32>
    tpu.vector_store %arg9[%c0_6, %c0_7], %7 {strides = array<i32>} : memref<16x128xf32, #tpu.memory_space<vmem>>, vector<16x128xf32>,
    %c0_i32_8 = arith.constant 0 : i32
    %9 = arith.cmpi eq, %arg2, %c0_i32_8 : i32
    %10 = arith.extui %9 : i1 to i32
    %c0_i32_9 = arith.constant 0 : i32
    %11 = arith.cmpi ne, %10, %c0_i32_9 : i32
    scf.if %11 {
      %c0_10 = arith.constant 0 : index
      %c0_11 = arith.constant 0 : index
      %12 = vector.load %arg9[%c0_10, %c0_11] : memref<16x128xf32, #tpu.memory_space<vmem>>, vector<16x128xf32>
      %c0_12 = arith.constant 0 : index
      %c0_13 = arith.constant 0 : index
      %13 = vector.load %arg7[%c0_12, %c0_13] : memref<1x128xf32, #tpu.memory_space<vmem>>, vector<1x128xf32>
      %14 = vector.broadcast %13 : vector<1x128xf32> to vector<16x128xf32>
      %15 = arith.addf %12, %14 : vector<16x128xf32>
      %16 = math.tanh %15 : vector<16x128xf32>
      %c0_14 = arith.constant 0 : index
      %c0_15 = arith.constant 0 : index
      %17 = vector.load %arg8[%c0_14, %c0_15] : memref<16x128xf32, #tpu.memory_space<vmem>>, vector<16x128xf32>
      tpu.vector_store %arg8[%c0_14, %c0_15], %16 {strides = array<i32>} : memref<16x128xf32, #tpu.memory_space<vmem>>, vector<16x128xf32>,
    } else {
    }
    return
  }
  func.func @transform_0(%arg0: i32, %arg1: i32, %arg2: i32) -> (i32, i32) {
    %c0_i32 = arith.constant 0 : i32
    return %arg1, %arg2 : i32, i32
  }
  func.func @transform_1(%arg0: i32, %arg1: i32, %arg2: i32) -> (i32, i32) {
    %c0_i32 = arith.constant 0 : i32
    %c0_i32_0 = arith.constant 0 : i32
    return %arg1, %c0_i32 : i32, i32
  }
  func.func @transform_2(%arg0: i32, %arg1: i32, %arg2: i32) -> (i32, i32) {
    %c0_i32 = arith.constant 0 : i32
    return %arg2, %arg0 : i32, i32
  }
  func.func @transform_3(%arg0: i32, %arg1: i32, %arg2: i32) -> (i32, i32) {
    %c0_i32 = arith.constant 0 : i32
    %c0_i32_0 = arith.constant 0 : i32
    return %c0_i32, %arg0 : i32, i32
  }
  func.func @transform_4(%arg0: i32, %arg1: i32, %arg2: i32) -> (i32, i32) {
    %c0_i32 = arith.constant 0 : i32
    %c0_i32_0 = arith.constant 0 : i32
    return %c0_i32, %arg0 : i32, i32
  }
  func.func @transform_5(%arg0: i32, %arg1: i32, %arg2: i32) -> (i32, i32) {
    %c0_i32 = arith.constant 0 : i32
    return %arg1, %arg0 : i32, i32
  }
}

</mosaic_0001>

<bundles_post_ra>
// kernel: cell.1
= control target key start
LH: loop header
LB: loop body
LE: loop exit
PB: predicated region body
PF: predicated region fallthrough
CT: control target
= control target key end

     0   :  { %10 = vsyncpa [#allocation4], 0  ;;  %s350_s18 = smov [#allocation3]   ;;  %s436_s0 = inlined_call_operand.vmem [shape: bf16[16,128], index: 0, kind: input, shape index: {}]   ;;  %s437_s1 = inlined_call_operand.vmem [shape: bf16[16,32], index: 1, kind: input, shape index: {}]   ;;  %s438_s2 = inlined_call_operand.vmem [shape: bf16[128,128], index: 2, kind: input, shape index: {}]   ;;  %s439_s3 = inlined_call_operand.hbm [shape: bf16[32,128], index: 3, kind: input, shape index: {}]   ;;  %s440_s4 = inlined_call_operand.vmem [shape: f32[1,128], index: 4, kind: input, shape index: {}]   ;;  %s441_s5 = inlined_call_operand.vmem [shape: f32[16,128], index: 5, kind: output, shape index: {}]  }
   0x1   :  { %s22_s19 = sshll.u32 %s350_s18, 4  ;;  %s326_s22 = scalar_lea.hbm %s439_s3, 256  ;;  %s23_s19 = int_to_ptr.vmem [resolvable:$true] %s22_s19 }
   0x2   :  { %p327_p0 = scmp.ne.s32.totalorder %s439_s3, %s326_s22  ;;  %p330_p1 = scmp.lt.u32.totalorder %s326_s22, %s439_s3 }
   0x4   :  { %p332_p2 = pnand %p330_p1, %p327_p0 }
   0x6   :  { %335 = shalt.err (!%p332_p2)
}
   0x7   :  { %s336_s27 = scalar_lea.vmem %s23_s19, 256  ;;  %p341_p4 = scmp.lt.s32.totalorder %s23_s19, %s23_s19 }
   0x8   :  { %p337_p3 = scmp.ne.s32.totalorder %s23_s19, %s336_s27  ;;  %p342_p5 = scmp.lt.s32.totalorder %s336_s27, %s336_s27 }
   0xa   :  { %p343_p6 = por %p342_p5, %p341_p4 }
   0xc   :  { %p344_p7 = pnand %p343_p6, %p337_p3 }
   0xe   :  { %347 = shalt.err (!%p344_p7)
}
   0xf   :  { %s351_s28 = smov 64   ;;  %s352_s29 = smov 4  }
  0x10   :  { %28 = dma.hbm_to_vmem [thread:$0]  %s439_s3, 256, %s23_s19, [#allocation4], %s351_s28, %s351_s28, %s352_s29  }
  0x11   :  { %348 = dma.done.wait [#allocation4], 256  }
  0x12   :  { %349 = vsyncadd [#allocation4], 4294967040  ;;  %v353_v0 = vmov 0.0   ;;  %vm354_vm0 = vmmov 0   ;;  %v310_v1 = vld [vmem:[%s438_s2] sm:$0xff]   ;;  %v311_v2 = vld [vmem:[%s438_s2 + $0x8] sm:$0xff]  }
  0x13   :  { %285 = vmatprep.subr.bf16.mxu1 %v353_v0  ;;  %277 = vmatprep.subr.bf16.mxu0 %v353_v0  ;;  %v312_v3 = vld [vmem:[%s438_s2 + $0x10] sm:$0xff]   ;;  %v316_v4 = vld [vmem:[#allocation3] sm:$0xff]   ;;  %v318_v5 = vld [vmem:[#allocation3 + $0x8] sm:$0xff]   ;;  %vm62_vm1 = vcmask 261120  }
  0x14   :  { %281 = vmatprep.mubr.msk.bf16.mxu0 %vm354_vm0, %v353_v0  ;;  %301 = vmatprep.mubr.msk.bf16.mxu1 %vm354_vm0, %v353_v0  ;;  %v313_v6 = vld [vmem:[%s438_s2 + $0x18] sm:$0xff]   ;;  %v319_v7 = vld [vmem:[%s437_s1] sm:$0xff]   ;;  %v315_v9 = vld [vmem:[%s438_s2 + $0x28] sm:$0xff]  }
  0x15   :  { %286 = vmatpush3.bf16.msra.mxu1 %v310_v1  ;;  %278 = vmatpush3.bf16.msra.mxu0 %v316_v4  ;;  %v314_v8 = vld [vmem:[%s438_s2 + $0x20] sm:$0xff]   ;;  %v317_v10 = vld [vmem:[%s438_s2 + $0x30] sm:$0xff]   ;;  %v320_v11 = vld [vmem:[%s438_s2 + $0x38] sm:$0xff]  }
  0x16   :  { %287 = vmatprep.subr.bf16.mxu1 %v353_v0  ;;  %279 = vmatprep.subr.bf16.mxu0 %v353_v0  ;;  %v321_v12 = vld [vmem:[%s436_s0] sm:$0xff]  }
  0x17   :  { %v264_v18 = vld [vmem:[%s440_s4] ss:$0 sm:$0xff] }
  0x19   :  { %288 = vmatpush3.bf16.msra.mxu1 %v311_v2  ;;  %280 = vmatpush3.bf16.msra.mxu0 %v318_v5 }
  0x1a   :  { %289 = vmatprep.subr.bf16.mxu1 %v353_v0 }
  0x1c   :  { %282 = vmatmul.mubr.msk.bf16.vlgmr.msra.gmra.mrb[0].mxu0 %vm62_vm1, %v319_v7 }
  0x1d   :  { %290 = vmatpush3.bf16.msra.mxu1 %v312_v3 }
  0x1e   :  { %291 = vmatprep.subr.bf16.mxu1 %v353_v0 }
  0x21   :  { %292 = vmatpush3.bf16.msra.mxu1 %v313_v6 }
  0x22   :  { %293 = vmatprep.subr.bf16.mxu1 %v353_v0 }
  0x25   :  { %294 = vmatpush3.bf16.msra.mxu1 %v314_v8 }
  0x26   :  { %295 = vmatprep.subr.bf16.mxu1 %v353_v0 }
  0x29   :  { %296 = vmatpush3.bf16.msra.mxu1 %v315_v9 }
  0x2a   :  { %297 = vmatprep.subr.bf16.mxu1 %v353_v0 }
  0x2d   :  { %298 = vmatpush3.bf16.msra.mxu1 %v317_v10 }
  0x2e   :  { %299 = vmatprep.subr.bf16.mxu1 %v353_v0 }
  0x31   :  { %300 = vmatpush3.bf16.msra.mxu1 %v320_v11 }
  0x34   :  { %302 = vmatmul.mubr.bf16.vlgmr.msra.gmra.mrb[0].mxu1 %v321_v12 }
  0xef   :  { %v100_v13 = vpop.f32.mrb[0].mxu0 }
  0xf0   :  { %v283_v14 = vpop.f32.mrb[1].mxu0 }
  0xf1   :  { %v103_v15 = vpop.f32.mrb[2].mxu0 }
  0xf2   :  { %v284_v16 = vpop.f32.mrb[3].mxu0 }
 0x107   :  { %v217_v17 = vpop.f32.mrb[0].mxu1 }
 0x108   :  { %v224_v19 = vadd.f32 %v217_v17, %v100_v13  ;;  %v303_v20 = vpop.f32.mrb[1].mxu1 }
 0x109   :  { %v220_v21 = vpop.f32.mrb[2].mxu1 }
 0x10a   :  { %v240_v22 = vadd.f32 %v264_v18, %v224_v19  ;;  %v225_v23 = vadd.f32 %v220_v21, %v103_v15  ;;  %v304_v24 = vpop.f32.mrb[3].mxu1 }
 0x10c   :  { %322 = vtanh.f32 %v240_v22  ;;  %v241_v25 = vadd.f32 %v264_v18, %v225_v23 }
 0x10e   :  { %324 = vtanh.f32 %v241_v25 }
 0x116   :  { %v323_v26 = vpop.eup %322 }
 0x117   :  { %244 = vst [vmem:[%s441_s5] sm:$0xff] %v323_v26 }
 0x118   :  { %v325_v27 = vpop.eup %324 }
 0x119   :  { %245 = vst [vmem:[%s441_s5 + $0x8] sm:$0xff] %v325_v27 }
 0x11a   :  { %250 = vsyncpa [#allocation4], 1 }

</bundles_post_ra>
